<compile_context>
chip_gen: v6e
topology: v6e:2x2x1
jax: 0.10.0
libtpu: 0.0.40
codegen_flags: <defaults>
</compile_context>

<pallas_src>
import math

import jax
import jax.numpy as jnp
from jax.experimental import pallas as pl
from jax.experimental.pallas import tpu as pltpu


def _round_up(v, m):
    return ((v + m - 1) // m) * m


# -----------------------------------------------------------------------------
# Pallas kernel: transpose-in-kernel -> conv1+bn1+relu -> conv2+bn2+relu
#                -> conv3 (lane-padded, scale-folded) -> fused center add
# -----------------------------------------------------------------------------
def _proposal_head_kernel(x_ref, xyz_ref, w1_ref, b1_ref, w2_ref, b2_ref,
                          w3_ref, b3_ref, out_ref):
    # x_ref:   (1, 128, TK) f32  channels-first feature tile, straight from HBM.
    # xyz_ref: (1, TK, 3)   f32  aggregated vote xyz tile (fused center add).
    # out_ref: (1, TK, Cpad) f32 lane-dense output slab tile.
    x = x_ref[0]                                  # (128, TK) f32
    xt = jnp.transpose(x).astype(jnp.bfloat16)    # (TK, 128) — XLU, idle slot

    h1 = jnp.dot(xt, w1_ref[...], preferred_element_type=jnp.float32) + b1_ref[...]
    h1 = jnp.maximum(h1, 0.0).astype(jnp.bfloat16)

    h2 = jnp.dot(h1, w2_ref[...], preferred_element_type=jnp.float32) + b2_ref[...]
    h2 = jnp.maximum(h2, 0.0).astype(jnp.bfloat16)

    # conv3 with N padded to a multiple of 128; extra columns carry the
    # pre-scaled (pi/NH) heading residuals.
    net = jnp.dot(h2, w3_ref[...], preferred_element_type=jnp.float32) + b3_ref[...]

    # Fused center add: lanes 2:5 += aggregated_vote_xyz (VPU-only mask/select).
    xyz = xyz_ref[0]                              # (TK, 3) f32
    col = jax.lax.broadcasted_iota(jnp.int32, net.shape, 1)
    for c in range(3):
        net = jnp.where(col == 2 + c, net + xyz[:, c:c + 1], net)

    out_ref[0] = net.astype(out_ref.dtype)


# -----------------------------------------------------------------------------
# One-time parameter folding (call at model load, NOT per forward).
# -----------------------------------------------------------------------------
def prepare_params(params, num_heading_bin, eps=1e-5):
    NH = num_heading_bin
    NH3 = NH * 3
    C3 = 5 + 2 * NH3            # conv3 output channels: 2 + 3 + NH*3*2
    Ctot = C3 + NH3             # + pre-scaled heading residual columns
    Cpad = _round_up(Ctot, 128)

    def fold_bn(w, b, gamma, beta, mean, var):
        scale = gamma / jnp.sqrt(var + eps)       # (Cout,)
        return w * scale[None, :], (b - mean) * scale + beta

    w1, b1 = fold_bn(params["w1"], params["b1"], params["bn1_gamma"],
                     params["bn1_beta"], params["bn1_mean"], params["bn1_var"])
    w2, b2 = fold_bn(params["w2"], params["b2"], params["bn2_gamma"],
                     params["bn2_beta"], params["bn2_mean"], params["bn2_var"])
    w3, b3 = params["w3"], params["b3"]           # (128, C3), (C3,)

    hscale = math.pi / NH
    w3p = jnp.zeros((w3.shape[0], Cpad), jnp.float32)
    w3p = w3p.at[:, :C3].set(w3)
    w3p = w3p.at[:, C3:Ctot].set(w3[:, 5 + NH3:5 + 2 * NH3] * hscale)
    b3p = jnp.zeros((Cpad,), jnp.float32)
    b3p = b3p.at[:C3].set(b3)
    b3p = b3p.at[C3:Ctot].set(b3[5 + NH3:5 + 2 * NH3] * hscale)

    return {
        "w1b": w1.astype(jnp.bfloat16),
        "b1r": b1.reshape(1, -1).astype(jnp.float32),
        "w2b": w2.astype(jnp.bfloat16),
        "b2r": b2.reshape(1, -1).astype(jnp.float32),
        "w3b": w3p.astype(jnp.bfloat16),
        "b3r": b3p.reshape(1, -1).astype(jnp.float32),
    }


# -----------------------------------------------------------------------------
# Forward wrapper: pallas_call + decode_scores views.
# -----------------------------------------------------------------------------
def _proposal_module_forward(aggregated_vote_xyz, features, prep, num_heading_bin):
    """Args:
      aggregated_vote_xyz: (B, K, 3) f32 — output xyz of vote aggregation.
      features:            (B, 128, K) f32 — aggregated features (NCW).
      prep: dict from prepare_params() (folded/padded/bf16 weights).
      num_heading_bin: int (static).
    Returns: end_points dict mirroring decode_scores().
    """
    B, C_in, K = features.shape
    assert C_in == 128
    NH = num_heading_bin
    NH3 = NH * 3
    C3 = 5 + 2 * NH3
    Ctot = C3 + NH3
    Cpad = prep["w3b"].shape[1]

    # Row tile along K: one block per batch element for small/medium K (per-
    # grid-step overhead dominates), capped at 2048 rows (VMEM-safe on v5e's
    # 16 MiB scoped default).  Keep >=2 total blocks so the grid shards across
    # v7x's 2 TensorCores.
    if K <= 2048:
        TK = K
        if B == 1 and K >= 256 and (K % 256) == 0:
            TK = K // 2
    else:
        TK = 2048
    n_k = pl.cdiv(K, TK)   # ragged last block: rows are independent, Pallas clips writes

    grid = (B, n_k)
    const = lambda arr: pl.BlockSpec(arr.shape, lambda b, kt: (0,) * arr.ndim)

    out = pl.pallas_call(
        _proposal_head_kernel,
        out_shape=jax.ShapeDtypeStruct((B, K, Cpad), jnp.float32),
        grid_spec=pltpu.PrefetchScalarGridSpec(
            num_scalar_prefetch=0,
            grid=grid,
            in_specs=[
                pl.BlockSpec((1, C_in, TK), lambda b, kt: (b, 0, kt)),   # features
                pl.BlockSpec((1, TK, 3), lambda b, kt: (b, kt, 0)),      # vote xyz
                const(prep["w1b"]), const(prep["b1r"]),
                const(prep["w2b"]), const(prep["b2r"]),
                const(prep["w3b"]), const(prep["b3r"]),
            ],
            out_specs=pl.BlockSpec((1, TK, Cpad), lambda b, kt: (b, kt, 0)),
        ),
        compiler_params=pltpu.CompilerParams(
            dimension_semantics=("parallel", "parallel")),
    )(features, aggregated_vote_xyz,
      prep["w1b"], prep["b1r"], prep["w2b"], prep["b2r"], prep["w3b"], prep["b3r"])

    # decode_scores: pure views of the lane-dense slab (center add already fused).
    net = out                                      # (B, K, Cpad)
    end_points = {}
    end_points["aggregated_vote_xyz"] = aggregated_vote_xyz
    end_points["objectness_scores"] = net[:, :, 0:2]
    end_points["center"] = net[:, :, 2:5]                        # add fused in-kernel
    end_points["heading_scores"] = net[:, :, 5:5 + NH3]
    end_points["heading_residuals_normalized"] = net[:, :, 5 + NH3:5 + 2 * NH3]
    end_points["heading_residuals"] = net[:, :, C3:Ctot]         # pi/NH folded in w3
    return end_points


proposal_module_forward = jax.jit(_proposal_module_forward,
                                  static_argnames=("num_heading_bin",))


# -----------------------------------------------------------------------------
# Deterministic parameter init (shapes match nn.Conv1d / nn.BatchNorm1d in
# ProposalModule.__init__).  Conv1d weights (Cout, Cin, 1) stored as (Cin, Cout).
# -----------------------------------------------------------------------------
def init_params(key, num_heading_bin):
    C3 = 2 + 3 + num_heading_bin * 3 * 2
    ks = jax.random.split(key, 12)
    return {
        "w1": 0.05 * jax.random.normal(ks[0], (128, 128), jnp.float32),
        "b1": 0.05 * jax.random.normal(ks[1], (128,), jnp.float32),
        "w2": 0.05 * jax.random.normal(ks[2], (128, 128), jnp.float32),
        "b2": 0.05 * jax.random.normal(ks[3], (128,), jnp.float32),
        "w3": 0.05 * jax.random.normal(ks[4], (128, C3), jnp.float32),
        "b3": 0.05 * jax.random.normal(ks[5], (C3,), jnp.float32),
        "bn1_gamma": 1.0 + 0.1 * jax.random.normal(ks[6], (128,), jnp.float32),
        "bn1_beta": 0.1 * jax.random.normal(ks[7], (128,), jnp.float32),
        "bn1_mean": 0.1 * jax.random.normal(ks[8], (128,), jnp.float32),
        "bn1_var": jnp.abs(1.0 + 0.1 * jax.random.normal(ks[9], (128,), jnp.float32)),
        "bn2_gamma": 1.0 + 0.1 * jax.random.normal(ks[10], (128,), jnp.float32),
        "bn2_beta": 0.1 * jax.random.normal(ks[11], (128,), jnp.float32),
        "bn2_mean": jnp.zeros((128,), jnp.float32),
        "bn2_var": jnp.ones((128,), jnp.float32),
    }


# -----------------------------------------------------------------------------
# Pure-JAX f32 reference for a sanity check
# -----------------------------------------------------------------------------
def reference_forward(aggregated_vote_xyz, features, params, num_heading_bin,
                      eps=1e-5):
    NH = num_heading_bin
    x = jnp.transpose(features, (0, 2, 1))                         # (B, K, 128)

    def bn(y, g, b, m, v):
        return (y - m) / jnp.sqrt(v + eps) * g + b

    h1 = jax.nn.relu(bn(x @ params["w1"] + params["b1"],
                        params["bn1_gamma"], params["bn1_beta"],
                        params["bn1_mean"], params["bn1_var"]))
    h2 = jax.nn.relu(bn(h1 @ params["w2"] + params["b2"],
                        params["bn2_gamma"], params["bn2_beta"],
                        params["bn2_mean"], params["bn2_var"]))
    net = h2 @ params["w3"] + params["b3"]                         # (B, K, C3)
    return {
        "objectness_scores": net[:, :, 0:2],
        "center": aggregated_vote_xyz + net[:, :, 2:5],
        "heading_scores": net[:, :, 5:5 + NH * 3],
        "heading_residuals_normalized": net[:, :, 5 + NH * 3:5 + NH * 6],
        "heading_residuals": net[:, :, 5 + NH * 3:5 + NH * 6] * (math.pi / NH),
    }


if __name__ == "__main__":
    B = 2
    num_proposal = 8          # K
    num_heading_bin = 4       # NH  -> conv3 channels = 2 + 3 + 24 = 29

    key = jax.random.PRNGKey(0)
    k_xyz, k_feat, k_params = jax.random.split(key, 3)

    aggregated_vote_xyz = jax.random.normal(k_xyz, (B, num_proposal, 3), jnp.float32)
    features = jax.random.normal(k_feat, (B, 128, num_proposal), jnp.float32)
    params = init_params(k_params, num_heading_bin)

    # One-time parameter folding ("model load" time; not in the per-call path).
    prep = prepare_params(params, num_heading_bin)
    prep = jax.tree_util.tree_map(jnp.asarray, prep)

    end_points = proposal_module_forward(
        aggregated_vote_xyz, features, prep, num_heading_bin)
    jax.block_until_ready(end_points)

    ref = reference_forward(aggregated_vote_xyz, features, params, num_heading_bin)
    # bf16 matmul inputs with f32 accumulation -> loosened tolerance vs f32 ref.
    for name in ("objectness_scores", "center", "heading_scores",
                 "heading_residuals_normalized", "heading_residuals"):
        assert end_points[name].shape == ref[name].shape, name
        assert jnp.allclose(end_points[name], ref[name], atol=5e-2, rtol=5e-2), name

    print("KERNEL_OK")
</pallas_src>

<mosaic_0001>
module attributes {stable_mosaic.version = 11 : i64} {
  func.func @_proposal_head_kernel(%arg0: i32, %arg1: i32, %arg2: memref<1x128x8xf32, #tpu.memory_space<vmem>>, %arg3: memref<1x8x3xf32, #tpu.memory_space<vmem>>, %arg4: memref<128x128xbf16, #tpu.memory_space<vmem>>, %arg5: memref<1x128xf32, #tpu.memory_space<vmem>>, %arg6: memref<128x128xbf16, #tpu.memory_space<vmem>>, %arg7: memref<1x128xf32, #tpu.memory_space<vmem>>, %arg8: memref<128x128xbf16, #tpu.memory_space<vmem>>, %arg9: memref<1x128xf32, #tpu.memory_space<vmem>>, %arg10: memref<1x8x128xf32, #tpu.memory_space<vmem>>) attributes {dimension_semantics = [#tpu.dimension_semantics<parallel>, #tpu.dimension_semantics<parallel>], iteration_bounds = array<i64: 2, 1>, scalar_prefetch = 0 : i64, scratch_operands = 0 : i64, tpu.core_type = #tpu.core_type<tc>, window_params = [{transform_indices = @transform_0, window_bounds = array<i64: 1, 128, 8>}, {transform_indices = @transform_1, window_bounds = array<i64: 1, 8, 3>}, {pipeline_mode = #tpu.pipeline_mode<synchronous>, transform_indices = @transform_2, window_bounds = array<i64: 128, 128>}, {pipeline_mode = #tpu.pipeline_mode<synchronous>, transform_indices = @transform_3, window_bounds = array<i64: 1, 128>}, {pipeline_mode = #tpu.pipeline_mode<synchronous>, transform_indices = @transform_4, window_bounds = array<i64: 128, 128>}, {pipeline_mode = #tpu.pipeline_mode<synchronous>, transform_indices = @transform_5, window_bounds = array<i64: 1, 128>}, {pipeline_mode = #tpu.pipeline_mode<synchronous>, transform_indices = @transform_6, window_bounds = array<i64: 128, 128>}, {pipeline_mode = #tpu.pipeline_mode<synchronous>, transform_indices = @transform_7, window_bounds = array<i64: 1, 128>}, {transform_indices = @transform_8, window_bounds = array<i64: 1, 8, 128>}]} {
    %c0 = arith.constant 0 : index
    %c0_0 = arith.constant 0 : index
    %c0_1 = arith.constant 0 : index
    %0 = vector.load %arg2[%c0, %c0_0, %c0_1] : memref<1x128x8xf32, #tpu.memory_space<vmem>>, vector<1x128x8xf32>
    %1 = vector.shape_cast %0 : vector<1x128x8xf32> to vector<128x8xf32>
    %2 = tpu.transpose %1, [1, 0] : vector<128x8xf32> -> vector<8x128xf32>
    %3 = arith.truncf %2 : vector<8x128xf32> to vector<8x128xbf16>
    %c0_2 = arith.constant 0 : index
    %c0_3 = arith.constant 0 : index
    %4 = vector.load %arg4[%c0_2, %c0_3] : memref<128x128xbf16, #tpu.memory_space<vmem>>, vector<128x128xbf16>
    %cst = arith.constant dense<0.000000e+00> : vector<8x128xf32>
    %5 = tpu.matmul %3, %4, %cst {dimension_numbers = #tpu.dot_dimension_numbers<[1], [0], [0], [1], [0, 0, 1, 1], [], []>} : vector<8x128xbf16>, vector<128x128xbf16>, vector<8x128xf32> -> vector<8x128xf32>
    %c0_4 = arith.constant 0 : index
    %c0_5 = arith.constant 0 : index
    %6 = vector.load %arg5[%c0_4, %c0_5] : memref<1x128xf32, #tpu.memory_space<vmem>>, vector<1x128xf32>
    %7 = vector.broadcast %6 : vector<1x128xf32> to vector<8x128xf32>
    %8 = arith.addf %5, %7 : vector<8x128xf32>
    %cst_6 = arith.constant 0.000000e+00 : f32
    %9 = vector.broadcast %cst_6 : f32 to vector<8x128xf32>
    %10 = arith.maximumf %8, %9 : vector<8x128xf32>
    %11 = arith.truncf %10 : vector<8x128xf32> to vector<8x128xbf16>
    %c0_7 = arith.constant 0 : index
    %c0_8 = arith.constant 0 : index
    %12 = vector.load %arg6[%c0_7, %c0_8] : memref<128x128xbf16, #tpu.memory_space<vmem>>, vector<128x128xbf16>
    %cst_9 = arith.constant dense<0.000000e+00> : vector<8x128xf32>
    %13 = tpu.matmul %11, %12, %cst_9 {dimension_numbers = #tpu.dot_dimension_numbers<[1], [0], [0], [1], [0, 0, 1, 1], [], []>} : vector<8x128xbf16>, vector<128x128xbf16>, vector<8x128xf32> -> vector<8x128xf32>
    %c0_10 = arith.constant 0 : index
    %c0_11 = arith.constant 0 : index
    %14 = vector.load %arg7[%c0_10, %c0_11] : memref<1x128xf32, #tpu.memory_space<vmem>>, vector<1x128xf32>
    %15 = vector.broadcast %14 : vector<1x128xf32> to vector<8x128xf32>
    %16 = arith.addf %13, %15 : vector<8x128xf32>
    %cst_12 = arith.constant 0.000000e+00 : f32
    %17 = vector.broadcast %cst_12 : f32 to vector<8x128xf32>
    %18 = arith.maximumf %16, %17 : vector<8x128xf32>
    %19 = arith.truncf %18 : vector<8x128xf32> to vector<8x128xbf16>
    %c0_13 = arith.constant 0 : index
    %c0_14 = arith.constant 0 : index
    %20 = vector.load %arg8[%c0_13, %c0_14] : memref<128x128xbf16, #tpu.memory_space<vmem>>, vector<128x128xbf16>
    %cst_15 = arith.constant dense<0.000000e+00> : vector<8x128xf32>
    %21 = tpu.matmul %19, %20, %cst_15 {dimension_numbers = #tpu.dot_dimension_numbers<[1], [0], [0], [1], [0, 0, 1, 1], [], []>} : vector<8x128xbf16>, vector<128x128xbf16>, vector<8x128xf32> -> vector<8x128xf32>
    %c0_16 = arith.constant 0 : index
    %c0_17 = arith.constant 0 : index
    %22 = vector.load %arg9[%c0_16, %c0_17] : memref<1x128xf32, #tpu.memory_space<vmem>>, vector<1x128xf32>
    %23 = vector.broadcast %22 : vector<1x128xf32> to vector<8x128xf32>
    %24 = arith.addf %21, %23 : vector<8x128xf32>
    %c0_18 = arith.constant 0 : index
    %c0_19 = arith.constant 0 : index
    %c0_20 = arith.constant 0 : index
    %25 = vector.load %arg3[%c0_18, %c0_19, %c0_20] : memref<1x8x3xf32, #tpu.memory_space<vmem>>, vector<1x8x3xf32>
    %26 = vector.shape_cast %25 : vector<1x8x3xf32> to vector<8x3xf32>
    %27 = tpu.iota {dimensions = array<i32: 1>} : vector<8x128xi32>
    %c2_i32 = arith.constant 2 : i32
    %28 = vector.broadcast %c2_i32 : i32 to vector<8x128xi32>
    %29 = arith.cmpi eq, %27, %28 : vector<8x128xi32>
    %30 = vector.extract_strided_slice %26 {offsets = [0, 0], sizes = [8, 1], strides = [1, 1]} : vector<8x3xf32> to vector<8x1xf32>
    %31 = vector.broadcast %30 : vector<8x1xf32> to vector<8x128xf32>
    %32 = arith.addf %24, %31 : vector<8x128xf32>
    %33 = arith.select %29, %32, %24 : vector<8x128xi1>, vector<8x128xf32>
    %c3_i32 = arith.constant 3 : i32
    %34 = vector.broadcast %c3_i32 : i32 to vector<8x128xi32>
    %35 = arith.cmpi eq, %27, %34 : vector<8x128xi32>
    %36 = vector.extract_strided_slice %26 {offsets = [0, 1], sizes = [8, 1], strides = [1, 1]} : vector<8x3xf32> to vector<8x1xf32>
    %37 = vector.broadcast %36 : vector<8x1xf32> to vector<8x128xf32>
    %38 = arith.addf %33, %37 : vector<8x128xf32>
    %39 = arith.select %35, %38, %33 : vector<8x128xi1>, vector<8x128xf32>
    %c4_i32 = arith.constant 4 : i32
    %40 = vector.broadcast %c4_i32 : i32 to vector<8x128xi32>
    %41 = arith.cmpi eq, %27, %40 : vector<8x128xi32>
    %42 = vector.extract_strided_slice %26 {offsets = [0, 2], sizes = [8, 1], strides = [1, 1]} : vector<8x3xf32> to vector<8x1xf32>
    %43 = vector.broadcast %42 : vector<8x1xf32> to vector<8x128xf32>
    %44 = arith.addf %39, %43 : vector<8x128xf32>
    %45 = arith.select %41, %44, %39 : vector<8x128xi1>, vector<8x128xf32>
    %c0_21 = arith.constant 0 : index
    %c0_22 = arith.constant 0 : index
    %c0_23 = arith.constant 0 : index
    %46 = vector.load %arg10[%c0_21, %c0_22, %c0_23] : memref<1x8x128xf32, #tpu.memory_space<vmem>>, vector<1x8x128xf32>
    %47 = vector.shape_cast %46 : vector<1x8x128xf32> to vector<8x128xf32>
    %48 = vector.shape_cast %45 : vector<8x128xf32> to vector<1x8x128xf32>
    tpu.vector_store %arg10[%c0_21, %c0_22, %c0_23], %48 {strides = array<i32>} : memref<1x8x128xf32, #tpu.memory_space<vmem>>, vector<1x8x128xf32>,
    return
  }
  func.func @transform_0(%arg0: i32, %arg1: i32) -> (i32, i32, i32) {
    %c0_i32 = arith.constant 0 : i32
    %c0_i32_0 = arith.constant 0 : i32
    return %arg0, %c0_i32, %arg1 : i32, i32, i32
  }
  func.func @transform_1(%arg0: i32, %arg1: i32) -> (i32, i32, i32) {
    %c0_i32 = arith.constant 0 : i32
    %c0_i32_0 = arith.constant 0 : i32
    return %arg0, %arg1, %c0_i32 : i32, i32, i32
  }
  func.func @transform_2(%arg0: i32, %arg1: i32) -> (i32, i32) {
    %c0_i32 = arith.constant 0 : i32
    %c0_i32_0 = arith.constant 0 : i32
    %c0_i32_1 = arith.constant 0 : i32
    return %c0_i32, %c0_i32_0 : i32, i32
  }
  func.func @transform_3(%arg0: i32, %arg1: i32) -> (i32, i32) {
    %c0_i32 = arith.constant 0 : i32
    %c0_i32_0 = arith.constant 0 : i32
    %c0_i32_1 = arith.constant 0 : i32
    return %c0_i32, %c0_i32_0 : i32, i32
  }
  func.func @transform_4(%arg0: i32, %arg1: i32) -> (i32, i32) {
    %c0_i32 = arith.constant 0 : i32
    %c0_i32_0 = arith.constant 0 : i32
    %c0_i32_1 = arith.constant 0 : i32
    return %c0_i32, %c0_i32_0 : i32, i32
  }
  func.func @transform_5(%arg0: i32, %arg1: i32) -> (i32, i32) {
    %c0_i32 = arith.constant 0 : i32
    %c0_i32_0 = arith.constant 0 : i32
    %c0_i32_1 = arith.constant 0 : i32
    return %c0_i32, %c0_i32_0 : i32, i32
  }
  func.func @transform_6(%arg0: i32, %arg1: i32) -> (i32, i32) {
    %c0_i32 = arith.constant 0 : i32
    %c0_i32_0 = arith.constant 0 : i32
    %c0_i32_1 = arith.constant 0 : i32
    return %c0_i32, %c0_i32_0 : i32, i32
  }
  func.func @transform_7(%arg0: i32, %arg1: i32) -> (i32, i32) {
    %c0_i32 = arith.constant 0 : i32
    %c0_i32_0 = arith.constant 0 : i32
    %c0_i32_1 = arith.constant 0 : i32
    return %c0_i32, %c0_i32_0 : i32, i32
  }
  func.func @transform_8(%arg0: i32, %arg1: i32) -> (i32, i32, i32) {
    %c0_i32 = arith.constant 0 : i32
    %c0_i32_0 = arith.constant 0 : i32
    return %arg0, %arg1, %c0_i32 : i32, i32, i32
  }
}

</mosaic_0001>

<bundles_post_ra>
// kernel: _proposal_module_forward.1
= control target key start
LH: loop header
LB: loop body
LE: loop exit
PB: predicated region body
PF: predicated region fallthrough
CT: control target
= control target key end

     0   :  { %s1125_s27 = smov 0   ;;  %s1127_s28 = smov 0   ;;  %s1298_s0 = inlined_call_operand.vmem [shape: f32[2,128,8], index: 0, kind: input, shape index: {}]   ;;  %s1299_s1 = inlined_call_operand.vmem [shape: f32[2,8,3], index: 1, kind: input, shape index: {}]   ;;  %s1300_s2 = inlined_call_operand.vmem [shape: bf16[128,128], index: 2, kind: input, shape index: {}]   ;;  %s1301_s3 = inlined_call_operand.vmem [shape: f32[1,128], index: 3, kind: input, shape index: {}]   ;;  %s1302_s4 = inlined_call_operand.vmem [shape: bf16[128,128], index: 4, kind: input, shape index: {}]   ;;  %s1303_s5 = inlined_call_operand.vmem [shape: f32[1,128], index: 5, kind: input, shape index: {}]   ;;  %s1304_s6 = inlined_call_operand.vmem [shape: bf16[128,128], index: 6, kind: input, shape index: {}]   ;;  %s1305_s7 = inlined_call_operand.vmem [shape: f32[1,128], index: 7, kind: input, shape index: {}]   ;;  %s1306_s8 = inlined_call_operand.vmem [shape: f32[2,8,128], index: 8, kind: output, shape index: {}]  }
   0x1   :  { %s1129_s29 = smov 0  }
   0x2 LB: > { %s30_s30 = sadd.s32 1, %s1069_s28  ;;  %p872_p0 = scmp.ge.s32.totalorder %s1073_s29, 1  ;;  %s1073_s29 = sphi %s1129_s29, %s18_s29   ;;  %s1069_s28 = sphi %s1127_s28, %s1308_s28   ;;  %s1065_s27 = sphi %s1125_s27, %s1307_s27  }
   0x3   : > { %p32_p1 = scmp.ge.s32.totalorder %s30_s30, 2  ;;  %p295_p2 = scmp.lt.s32.totalorder %s1073_s29, 3 }
   0x5   : > { %s1310_s30 = smov (%p32_p1, %s30_s30), 0  ;;  %p296_p3 = pnand %p872_p0, %p295_p2 }
   0x6   : > { %p341_p4 = scmp.lt.s32.totalorder (!%p296_p3), %s1065_s27, 1 }
   0x7   : > { %299 = sbr.rel (%p296_p3) target bundleno = 746 (0x2ea), region = 52 }
   0xc   : > { %v1075_v0 = vmov 0.0   ;;  %v1027_v1 = vld [vmem:[%s1300_s2 + $0x38] sm:$0xff]   ;;  %s1312_s27 = smov (!%p341_p4, %s1065_s27), 1  ;;  %v1028_v2 = vld [vmem:[%s1300_s2 + $0x30] sm:$0xff]   ;;  %vm1076_vm0 = vmmov 0   ;;  %v1029_v4 = vld [vmem:[%s1300_s2 + $0x28] sm:$0xff]  }
   0xd   : > { %934 = vmatprep.subr.bf16.mxu0 %v1075_v0  ;;  %954 = vmatprep.subr.bf16.mxu1 %v1075_v0  ;;  %s906_s13 = sshll.u32 %s1312_s27, 7  ;;  %v1030_v6 = vld [vmem:[%s1300_s2 + $0x20] sm:$0xff]   ;;  %v1031_v8 = vld [vmem:[%s1300_s2 + $0x18] sm:$0xff]   ;;  %v1036_v11 = vld [vmem:[%s1302_s4 + $0x30] sm:$0xff]   ;;  %v1077_v51 = vmov 0   ;;  %v1078_v52 = vmov 2  }
   0xe   : > { %935 = vmatpush3.bf16.msra.mxu0 %v1027_v1  ;;  %s1158_s16 = scalar_lea.vmem %s1298_s0, %s906_s13  ;;  %950 = vmatprep.mubr.msk.bf16.mxu0 %vm1076_vm0, %v1075_v0  ;;  %v1035_v9 = vld [vmem:[%s1302_s4 + $0x38] sm:$0xff]   ;;  %v1032_v13 = vld [vmem:[%s1300_s2 + $0x10] sm:$0xff]   ;;  %v1037_v14 = vld [vmem:[%s1302_s4 + $0x28] sm:$0xff]   ;;  %v1079_v54 = vmov 1  }
   0xf   : > { %936 = vmatprep.subr.bf16.mxu0 %v1075_v0  ;;  %v364_v3 = vld [vmem:[%s1158_s16] sm:$0xff]  ;;  %970 = vmatprep.mubr.msk.bf16.mxu1 %vm1076_vm0, %v1075_v0  ;;  %v365_v5 = vld [vmem:[%s1158_s16 + $0x8] sm:$0xff]  ;;  %v366_v7 = vld [vmem:[%s1158_s16 + $0x10] sm:$0xff] }
  0x10   : > { %380 = vxpose.xlu0.b32.start [1/16] (narrow) %v364_v3, 8  ;;  %v367_v10 = vld [vmem:[%s1158_s16 + $0x18] sm:$0xff]  ;;  %955 = vmatpush3.bf16.msra.mxu1 %v1035_v9  ;;  %v368_v12 = vld [vmem:[%s1158_s16 + $0x20] sm:$0xff]  ;;  %v1033_v15 = vld [vmem:[%s1300_s2 + $0x8] sm:$0xff]  }
  0x11   : > { %956 = vmatprep.subr.bf16.mxu1 %v1075_v0  ;;  %v369_v16 = vld [vmem:[%s1158_s16 + $0x28] sm:$0xff]  ;;  %v1038_v17 = vld [vmem:[%s1302_s4 + $0x20] sm:$0xff]   ;;  %v370_v19 = vld [vmem:[%s1158_s16 + $0x30] sm:$0xff]  ;;  %1023 = vset.pattern.permute.xlu1 %v1077_v51 }
  0x12   : > { %937 = vmatpush3.bf16.msra.mxu0 %v1028_v2  ;;  %v1034_v18 = vld [vmem:[%s1300_s2] sm:$0xff]   ;;  %v1039_v20 = vld [vmem:[%s1302_s4 + $0x18] sm:$0xff]   ;;  %v1040_v22 = vld [vmem:[%s1302_s4 + $0x10] sm:$0xff]  }
  0x13   : > { %938 = vmatprep.subr.bf16.mxu0 %v1075_v0  ;;  %v371_v21 = vld [vmem:[%s1158_s16 + $0x38] sm:$0xff]  ;;  %v372_v23 = vld [vmem:[%s1158_s16 + $0x40] sm:$0xff]  ;;  %v373_v24 = vld [vmem:[%s1158_s16 + $0x48] sm:$0xff] }
  0x14   : > { %381 = vxpose.xlu0.b32.cont [2/16] (narrow) %v365_v5, 8  ;;  %957 = vmatpush3.bf16.msra.mxu1 %v1036_v11  ;;  %v374_v25 = vld [vmem:[%s1158_s16 + $0x50] sm:$0xff]  ;;  %v375_v26 = vld [vmem:[%s1158_s16 + $0x58] sm:$0xff]  ;;  %v376_v27 = vld [vmem:[%s1158_s16 + $0x60] sm:$0xff] }
  0x15   : > { %958 = vmatprep.subr.bf16.mxu1 %v1075_v0  ;;  %v377_v28 = vld [vmem:[%s1158_s16 + $0x68] sm:$0xff]  ;;  %v378_v29 = vld [vmem:[%s1158_s16 + $0x70] sm:$0xff]  ;;  %v379_v30 = vld [vmem:[%s1158_s16 + $0x78] sm:$0xff]  ;;  %s875_s16 = sshll.u32 %s1312_s27, 3 }
  0x16   : > { %939 = vmatpush3.bf16.msra.mxu0 %v1029_v4  ;;  %v1041_v33 = vld [vmem:[%s1302_s4 + $0x8] sm:$0xff]   ;;  %v1042_v34 = vld [vmem:[%s1302_s4] sm:$0xff]   ;;  %v1043_v35 = vld [vmem:[%s1304_s6 + $0x38] sm:$0xff]   ;;  %s355_s12 = scalar_lea.vmem %s1299_s1, %s875_s16  ;;  %s362_s20 = scalar_lea.vmem %s1306_s8, %s875_s16 }
  0x17   : > { %940 = vmatprep.subr.bf16.mxu0 %v1075_v0  ;;  %v1044_v36 = vld [vmem:[%s1304_s6 + $0x30] sm:$0xff]   ;;  %v1045_v37 = vld [vmem:[%s1304_s6 + $0x28] sm:$0xff]   ;;  %v1046_v38 = vld [vmem:[%s1304_s6 + $0x20] sm:$0xff]  }
  0x18   : > { %382 = vxpose.xlu0.b32.cont [3/16] (narrow) %v366_v7, 8  ;;  %959 = vmatpush3.bf16.msra.mxu1 %v1037_v14  ;;  %v1047_v39 = vld [vmem:[%s1304_s6 + $0x18] sm:$0xff]   ;;  %v1048_v40 = vld [vmem:[%s1304_s6 + $0x10] sm:$0xff]   ;;  %v877_v41 = vld [vmem:[%s1301_s3] ss:$0 sm:$0xff] }
  0x19   : > { %960 = vmatprep.subr.bf16.mxu1 %v1075_v0  ;;  %v1049_v49 = vld [vmem:[%s1304_s6 + $0x8] sm:$0xff]   ;;  %v1050_v50 = vld [vmem:[%s1304_s6] sm:$0xff]  }
  0x1a   : > { %941 = vmatpush3.bf16.msra.mxu0 %v1030_v6  ;;  %v750_v53 = vld [vmem:[%s355_s12] sm:$0xff] }
  0x1b   : > { %942 = vmatprep.subr.bf16.mxu0 %v1075_v0  ;;  %756 = vperm.xlu1 %1023, %v750_v53   ;;  %v886_v55 = vld [vmem:[%s1303_s5] ss:$0 sm:$0xff] }
  0x1c   : > { %383 = vxpose.xlu0.b32.cont [4/16] (narrow) %v367_v10, 8  ;;  %961 = vmatpush3.bf16.msra.mxu1 %v1038_v17  ;;  %v895_v1 = vld [vmem:[%s1305_s7] ss:$0 sm:$0xff] }
  0x1d   : > { %962 = vmatprep.subr.bf16.mxu1 %v1075_v0 }
  0x1e   : > { %943 = vmatpush3.bf16.msra.mxu0 %v1031_v8 }
  0x1f   : > { %944 = vmatprep.subr.bf16.mxu0 %v1075_v0  ;;  %1024 = vset.pattern.permute.xlu1 %v1079_v54 }
  0x20   : > { %384 = vxpose.xlu0.b32.cont [5/16] (narrow) %v368_v12, 8  ;;  %963 = vmatpush3.bf16.msra.mxu1 %v1039_v20 }
  0x21   : > { %964 = vmatprep.subr.bf16.mxu1 %v1075_v0  ;;  %763 = vperm.xlu1 %1024, %v750_v53  }
  0x22   : > { %945 = vmatpush3.bf16.msra.mxu0 %v1032_v13 }
  0x23   : > { %946 = vmatprep.subr.bf16.mxu0 %v1075_v0 }
  0x24   : > { %385 = vxpose.xlu0.b32.cont [6/16] (narrow) %v369_v16, 8  ;;  %965 = vmatpush3.bf16.msra.mxu1 %v1040_v22 }
  0x25   : > { %966 = vmatprep.subr.bf16.mxu1 %v1075_v0  ;;  %1025 = vset.pattern.permute.xlu1 %v1078_v52 }
  0x26   : > { %947 = vmatpush3.bf16.msra.mxu0 %v1033_v15  ;;  %770 = vperm.xlu1 %1025, %v750_v53  }
  0x27   : > { %948 = vmatprep.subr.bf16.mxu0 %v1075_v0 }
  0x28   : > { %386 = vxpose.xlu0.b32.cont [7/16] (narrow) %v370_v19, 8  ;;  %967 = vmatpush3.bf16.msra.mxu1 %v1041_v33 }
  0x29   : > { %968 = vmatprep.subr.bf16.mxu1 %v1075_v0 }
  0x2a   : > { %949 = vmatpush3.bf16.msra.mxu0 %v1034_v18 }
  0x2b   : > { %974 = vmatprep.subr.bf16.mxu0 %v1075_v0 }
  0x2c   : > { %387 = vxpose.xlu0.b32.cont [8/16] (narrow) %v371_v21, 8  ;;  %969 = vmatpush3.bf16.msra.mxu1 %v1042_v34 }
  0x30   : > { %388 = vxpose.xlu0.b32.cont [9/16] (narrow) %v372_v23, 8 }
  0x34   : > { %389 = vxpose.xlu0.b32.cont [10/16] (narrow) %v373_v24, 8 }
  0x38   : > { %390 = vxpose.xlu0.b32.cont [11/16] (narrow) %v374_v25, 8 }
  0x3c   : > { %391 = vxpose.xlu0.b32.cont [12/16] (narrow) %v375_v26, 8 }
  0x40   : > { %392 = vxpose.xlu0.b32.cont [13/16] (narrow) %v376_v27, 8 }
  0x44   : > { %393 = vxpose.xlu0.b32.cont [14/16] (narrow) %v377_v28, 8 }
  0x48   : > { %394 = vxpose.xlu0.b32.cont [15/16] (narrow) %v378_v29, 8 }
  0x4c   : > { %395 = vxpose.xlu0.b32.end [16/16] (narrow) %v379_v30, 8 }
  0x75   : > { %1026 = vset.pattern.permute.xlu0 %v1078_v52 }
  0x8c   : > { %v396_v31 = vpop.trf.xlu0 }
  0x8d   : > { %v412_v32 = vpack.c.bf16 %v396_v31, %v396_v31 }
  0x8f   : > { %951 = vmatmul.mubr.bf16.vlgmr.msra.gmra.mxu0 %v412_v32 }
  0x90   : > { %990 = vmatprep.mubr.msk.bf16.mxu0 %vm1076_vm0, %v1075_v0  ;;  %975 = vmatpush3.bf16.msra.mxu0 %v1043_v35 }
  0x91   : > { %976 = vmatprep.subr.bf16.mxu0 %v1075_v0 }
  0x94   : > { %977 = vmatpush3.bf16.msra.mxu0 %v1044_v36 }
  0x95   : > { %978 = vmatprep.subr.bf16.mxu0 %v1075_v0 }
  0x96   : > { %v757_v63 = vpop.permute.xlu1 %756 }
  0x98   : > { %979 = vmatpush3.bf16.msra.mxu0 %v1045_v37 }
  0x99   : > { %980 = vmatprep.subr.bf16.mxu0 %v1075_v0 }
  0x9c   : > { %981 = vmatpush3.bf16.msra.mxu0 %v1046_v38  ;;  %v764_v4 = vpop.permute.xlu1 %763 }
  0x9d   : > { %982 = vmatprep.subr.bf16.mxu0 %v1075_v0 }
  0xa0   : > { %983 = vmatpush3.bf16.msra.mxu0 %v1047_v39 }
  0xa1   : > { %984 = vmatprep.subr.bf16.mxu0 %v1075_v0  ;;  %v771_v12 = vpop.permute.xlu1 %770 }
  0xa4   : > { %985 = vmatpush3.bf16.msra.mxu0 %v1048_v40 }
  0xa5   : > { %986 = vmatprep.subr.bf16.mxu0 %v1075_v0 }
  0xa8   : > { %987 = vmatpush3.bf16.msra.mxu0 %v1049_v49 }
  0xa9   : > { %988 = vmatprep.subr.bf16.mxu0 %v1075_v0  ;;  %v751_v0 = vlaneseq }
  0xab   : > { %v752_v2 = vand.u32 127, %v751_v0 }
  0xac   : > { %989 = vmatpush3.bf16.msra.mxu0 %v1050_v50 }
  0xad   : > { %vm753_vm1 = vcmp.eq.s32.totalorder %v752_v2, 2  ;;  %vm761_vm2 = vcmp.eq.s32.totalorder %v752_v2, 3  ;;  %vm768_vm3 = vcmp.eq.s32.totalorder %v752_v2, 4 }
 0x14f   : > { %v518_v42 = vpop.f32.mrf.mxu0 }
 0x150   : > { %v519_v43 = vadd.f32 %v877_v41, %v518_v42 }
 0x151   : > { %v952_v44 = vpop.f32.mrf.mxu0 }
 0x152   : > { %v524_v45 = vmax.f32 %v519_v43, 0.0 }
 0x153   : > { %v521_v46 = vpop.f32.mrf.mxu0 }
 0x154   : > { %v525_v47 = vpack.c.bf16 %v524_v45, %v524_v45 }
 0x155   : > { %v953_v48 = vpop.f32.mrf.mxu0 }
 0x156   : > { %971 = vmatmul.mubr.bf16.vlgmr.msra.gmra.mxu1 %v525_v47 }
 0x216   : > { %v631_v56 = vpop.f32.mrf.mxu1 }
 0x217   : > { %v632_v57 = vadd.f32 %v886_v55, %v631_v56 }
 0x218   : > { %v972_v58 = vpop.f32.mrf.mxu1 }
 0x219   : > { %v637_v59 = vmax.f32 %v632_v57, 0.0 }
 0x21a   : > { %v634_v60 = vpop.f32.mrf.mxu1 }
 0x21b   : > { %v638_v61 = vpack.c.bf16 %v637_v59, %v637_v59 }
 0x21c   : > { %v973_v62 = vpop.f32.mrf.mxu1 }
 0x21d   : > { %991 = vmatmul.mubr.bf16.vlgmr.msra.gmra.mxu0 %v638_v61 }
 0x2dd   : > { %v744_v3 = vpop.f32.mrf.mxu0 }
 0x2de   : > { %v745_v5 = vadd.f32 %v895_v1, %v744_v3 }
 0x2df   : > { %v992_v6 = vpop.f32.mrf.mxu0 }
 0x2e0   : > { %v759_v7 = vadd.f32 %v757_v63, %v745_v5 }
 0x2e1   : > { %v747_v8 = vpop.f32.mrf.mxu0 }
 0x2e2   : > { %v760_v9 = vsel %vm753_vm1, %v759_v7, %v745_v5 }
 0x2e3   : > { %v766_v10 = vadd.f32 %v764_v4, %v760_v9  ;;  %v993_v11 = vpop.f32.mrf.mxu0 }
 0x2e5   : > { %v767_v13 = vsel %vm761_vm2, %v766_v10, %v760_v9 }
 0x2e6   : > { %v773_v14 = vadd.f32 %v771_v12, %v767_v13 }
 0x2e8   : > { %v774_v15 = vsel %vm768_vm3, %v773_v14, %v767_v13 }
 0x2e9   : > { %775 = vst [vmem:[%s362_s20] sm:$0xff] %v774_v15 }
 0x2ea PF: > { %s18_s29 = sadd.s32 1, %s1073_s29   ;;  %s1307_s27 = smov %s1069_s28 }
 0x2eb   : > { %p15_p5 = scmp.ge.s32.totalorder %s18_s29, 4   ;;  %s1308_s28 = smov %s1310_s30 }
 0x2ed   :  { %17 = sbr.rel (!%p15_p5) target bundleno = 2 (0x2), region = 85 }

</bundles_post_ra>
